<compile_context>
chip_gen: v7x
topology: tpu7x:2x2x1
jax: 0.10.0
libtpu: 0.0.40
codegen_flags: <defaults>
</compile_context>

<pallas_src>
import math

import jax
import jax.numpy as jnp
from jax.experimental import pallas as pl
from jax.experimental.pallas import tpu as pltpu

NEG_SLOPE = 0.01      # nn.LeakyReLU default negative_slope
BN_EPS = 1e-5         # nn.BatchNorm1d default eps

LANE = 128            # TPU lane width (last dim)
SUBLANE = 8           # f32 sublane count (second-to-last dim)
MAX_BATCH_TILE = 1024  # per-grid-step batch rows (amortizes ~0.35us/step overhead)


# ------------------------------- small helpers ------------------------------ #

def _round_up(n, m):
    return ((n + m - 1) // m) * m


def _pad2d(a, rows, cols):
    return jnp.pad(a, ((0, rows - a.shape[0]), (0, cols - a.shape[1])))


# ------------------------------- Pallas kernel ------------------------------ #

def _make_encoder_kernel(n_layers):
    """Single fused kernel: n_layers x (matmul + affine + LeakyReLU) + fused heads."""

    def kernel(*refs):
        x_ref = refs[0]
        layer_refs = refs[1:1 + 2 * n_layers]          # (w0, s0, w1, s1, ...)
        wh_ref = refs[1 + 2 * n_layers]                 # concatenated head weight
        bh_ref = refs[2 + 2 * n_layers]                 # concatenated head bias
        o_ref = refs[3 + 2 * n_layers]

        h = x_ref[...]
        for i in range(n_layers):
            w = layer_refs[2 * i][...]
            s = layer_refs[2 * i + 1][...]
            # MXU operands in the weight dtype (bf16 fast path), f32 accumulation.
            y = jnp.dot(h.astype(w.dtype), w,
                        preferred_element_type=jnp.float32) + s
            h = jnp.maximum(y, NEG_SLOPE * y)            # LeakyReLU (single VALU op)
        wh = wh_ref[...]
        o_ref[...] = (jnp.dot(h.astype(wh.dtype), wh,
                              preferred_element_type=jnp.float32)
                      + bh_ref[...]).astype(o_ref.dtype)

    return kernel


# --------------------------- parameter construction ------------------------ #

def generate_hidden_dims(hidden_dim, latent_dim, depth, strategy="linear", order="decreasing"):
    """Mirrors suave.generate_hidden_dims: yields (in_dim, out_dim) pairs for the
    depth-1 hidden->hidden transitions, widths shrinking from hidden_dim to latent_dim."""
    if strategy in ("constant", "c"):
        dims = [hidden_dim] * depth
    elif strategy in ("linear", "l"):
        dims = [int(round(hidden_dim + (latent_dim - hidden_dim) * i / depth)) for i in range(depth)]
    elif strategy in ("geometric", "g"):
        ratio = (latent_dim / hidden_dim) ** (1.0 / depth)
        dims = [max(1, int(round(hidden_dim * (ratio ** i)))) for i in range(depth)]
    else:
        raise ValueError(f"unknown strategy {strategy}")
    if order == "increasing":
        dims = dims[::-1]
    for i in range(depth - 1):
        yield dims[i], dims[i + 1]


def _init_linear(key, din, dout):
    """Deterministic PyTorch-style Linear init: U(-1/sqrt(fan_in), 1/sqrt(fan_in))."""
    kw, kb = jax.random.split(key)
    bound = 1.0 / math.sqrt(din)
    w = jax.random.uniform(kw, (din, dout), jnp.float32, -bound, bound)
    b = jax.random.uniform(kb, (1, dout), jnp.float32, -bound, bound)
    return w, b


def init_encoder_params(key, input_dim, depth=3, hidden_dim=64, latent_dim=10, strategy="linear"):
    """Raw (unfused) parameters matching the PyTorch module at model.eval()."""
    dims_gen = list(generate_hidden_dims(hidden_dim, latent_dim, depth, strategy=strategy,
                                         order="decreasing"))
    layer_dims = [(input_dim, hidden_dim)] + dims_gen

    layers = []
    for (din, dout) in layer_dims:
        key, sub = jax.random.split(key)
        w, b = _init_linear(sub, din, dout)
        # Freshly-initialized BatchNorm1d in eval mode: gamma=1, beta=0, mean=0, var=1.
        gamma = jnp.ones((1, dout), jnp.float32)
        beta = jnp.zeros((1, dout), jnp.float32)
        running_mean = jnp.zeros((1, dout), jnp.float32)
        running_var = jnp.ones((1, dout), jnp.float32)
        scale = gamma / jnp.sqrt(running_var + BN_EPS)
        shift = beta - running_mean * scale
        layers.append((w, b, scale, shift))

    hidden_out = layer_dims[-1][1]
    key, k_mu, k_lv = jax.random.split(key, 3)
    w_mu, b_mu = _init_linear(k_mu, hidden_out, latent_dim)
    w_lv, b_lv = _init_linear(k_lv, hidden_out, latent_dim)
    return {"layers": layers, "heads": (w_mu, b_mu, w_lv, b_lv),
            "input_dim": input_dim, "latent_dim": latent_dim}


def prepare_fused_params(params, use_bf16=True):
    """Fold BN into weights, concatenate the heads, pad weight COLUMNS to 128 lanes
    (rows of the first layer stay at input_dim; the input stream is not over-padded),
    and optionally pre-cast the matmul operands to bf16 (MXU-native)."""
    input_dim = params["input_dim"]
    latent_dim = params["latent_dim"]
    wdtype = jnp.bfloat16 if use_bf16 else jnp.float32

    layers = []
    prev_width = input_dim                 # first-layer K is the true input_dim
    for (w, b, scale, shift) in params["layers"]:
        dout = w.shape[1]
        dout_pad = _round_up(dout, LANE)
        w_f = w * scale                    # fold BN per-channel scale into weight cols
        s_f = b * scale + shift            # fold Linear bias into BN shift
        w_p = _pad2d(w_f, prev_width, dout_pad).astype(wdtype)
        s_p = _pad2d(s_f, 1, dout_pad)     # shift stays f32
        layers.append((w_p, s_p))
        prev_width = dout_pad

    w_mu, b_mu, w_lv, b_lv = params["heads"]
    wh = jnp.concatenate([w_mu, w_lv], axis=1)   # (hidden, 2*latent)
    bh = jnp.concatenate([b_mu, b_lv], axis=1)   # (1, 2*latent)
    # Output kept at true width 2*latent_dim (no 128-lane pad): ~8x less writeback.
    wh_p = _pad2d(wh, prev_width, wh.shape[1]).astype(wdtype)
    return {"layers": layers, "head": (wh_p, bh)}


# --------------------------------- forward --------------------------------- #

def _vmem_bytes_estimate(tb, x_width, layers, wh, bh, out_width):
    total = 2 * tb * x_width * 4                 # double-buffered input tile (f32)
    total += 2 * tb * out_width * 4              # double-buffered output tile (f32)
    for (w, s) in layers:
        total += 2 * (w.size * w.dtype.itemsize + s.size * s.dtype.itemsize)
    total += 2 * (wh.size * wh.dtype.itemsize + bh.size * bh.dtype.itemsize)
    max_width = max([w.shape[1] for (w, _) in layers] + [out_width, x_width])
    total += 8 * tb * max_width * 4              # live activations / temporaries headroom
    return int(total)


@jax.jit
def encoder_forward(fused, x):
    """Single fused pallas_call over the whole encoder; returns (mu, logvar).
    Jitted end-to-end so the pad / call / slice plumbing fuses into one dispatch."""
    layers = fused["layers"]
    wh, bh = fused["head"]
    n_layers = len(layers)
    out_width = wh.shape[1]            # 2 * latent_dim (unpadded)
    latent_dim = out_width // 2
    batch, x_width = x.shape

    # Batch tiling: sublane-align, then split into >= 2 "parallel" grid steps for
    # batch >= 16 (feeds both v7x TensorCores); tiles chosen via cdiv so remainder
    # padding stays below one sublane group per tile; capped at MAX_BATCH_TILE rows.
    batch_al = _round_up(max(batch, SUBLANE), SUBLANE)
    if batch_al >= 2 * SUBLANE:
        n_tiles = max(2, pl.cdiv(batch_al, MAX_BATCH_TILE))
        tb = _round_up(pl.cdiv(batch_al, n_tiles), SUBLANE)
        batch_pad = tb * n_tiles
    else:
        tb = batch_al
        batch_pad = batch_al
    grid = (batch_pad // tb,)

    # No lane-padding of the input feature dim: full-last-dim block is legal and the
    # x HBM stream stays at its true width.
    x_p = jnp.pad(x.astype(jnp.float32), ((0, batch_pad - batch), (0, 0)))

    in_specs = [pl.BlockSpec((tb, x_width), lambda i: (i, 0))]
    args = [x_p]
    for (w, s) in layers:              # grid-invariant whole-array weight blocks
        in_specs.append(pl.BlockSpec(w.shape, lambda i: (0, 0)))
        in_specs.append(pl.BlockSpec(s.shape, lambda i: (0, 0)))
        args.extend((w, s))
    in_specs.append(pl.BlockSpec(wh.shape, lambda i: (0, 0)))
    in_specs.append(pl.BlockSpec(bh.shape, lambda i: (0, 0)))
    args.extend((wh, bh))

    flops = 2 * batch_pad * (sum(w.shape[0] * w.shape[1] for (w, _) in layers)
                             + wh.shape[0] * wh.shape[1])
    bytes_accessed = (x_p.size * 4
                      + sum(w.size * w.dtype.itemsize + s.size * s.dtype.itemsize
                            for (w, s) in layers)
                      + wh.size * wh.dtype.itemsize + bh.size * bh.dtype.itemsize
                      + batch_pad * out_width * 4)
    vmem_limit = int(min(64 << 20,
                         max(2 * _vmem_bytes_estimate(tb, x_width, layers, wh, bh, out_width),
                             8 << 20)))

    out = pl.pallas_call(
        _make_encoder_kernel(n_layers),
        out_shape=jax.ShapeDtypeStruct((batch_pad, out_width), jnp.float32),
        grid=grid,
        in_specs=in_specs,
        out_specs=pl.BlockSpec((tb, out_width), lambda i: (i, 0)),
        compiler_params=pltpu.CompilerParams(
            dimension_semantics=("parallel",),
            vmem_limit_bytes=vmem_limit),
        cost_estimate=pl.CostEstimate(flops=flops, transcendentals=0,
                                      bytes_accessed=bytes_accessed),
    )(*args)

    out = out[:batch]
    return out[:, :latent_dim], out[:, latent_dim:]


def encoder_forward_ref(params, x):
    """Pure-JAX reference (unfused, unpadded, f32) for correctness checking."""
    h = x
    for (w, b, scale, shift) in params["layers"]:
        y = h @ w + b
        y = y * scale + shift
        h = jnp.where(y >= 0, y, NEG_SLOPE * y)
    w_mu, b_mu, w_lv, b_lv = params["heads"]
    return h @ w_mu + b_mu, h @ w_lv + b_lv


# ----------------------------------- main ----------------------------------- #

if __name__ == "__main__":
    key = jax.random.PRNGKey(0)
    k_param, k_x = jax.random.split(key)

    # Small, forward-consistent shapes: x is (batch, input_dim).  batch=37 exercises
    # the multi-tile (2 TC) path and the cdiv remainder padding.
    batch, input_dim = 37, 16
    depth, hidden_dim, latent_dim = 3, 32, 8

    params = init_encoder_params(k_param, input_dim, depth=depth,
                                 hidden_dim=hidden_dim, latent_dim=latent_dim,
                                 strategy="linear")
    x = jax.random.normal(k_x, (batch, input_dim), jnp.float32)
    mu_ref, lv_ref = encoder_forward_ref(params, x)

    # Exact f32 operand path: tight check of the fused/padded kernel numerics.
    fused_f32 = prepare_fused_params(params, use_bf16=False)
    mu32, lv32 = encoder_forward(fused_f32, x)
    jax.block_until_ready((mu32, lv32))
    assert mu32.shape == (batch, latent_dim) and lv32.shape == (batch, latent_dim)
    assert jnp.allclose(mu32, mu_ref, atol=1e-4, rtol=1e-4)
    assert jnp.allclose(lv32, lv_ref, atol=1e-4, rtol=1e-4)

    # bf16-operand fast path (MXU-native on v5e/v6e/v7x), f32 accumulation: looser
    # tolerance because operand rounding changes results slightly.
    fused_bf16 = prepare_fused_params(params, use_bf16=True)
    mu16, lv16 = encoder_forward(fused_bf16, x)
    jax.block_until_ready((mu16, lv16))
    assert mu16.shape == (batch, latent_dim) and lv16.shape == (batch, latent_dim)
    assert jnp.allclose(mu16, mu_ref, atol=5e-2, rtol=5e-2)
    assert jnp.allclose(lv16, lv_ref, atol=5e-2, rtol=5e-2)

    print("KERNEL_OK")
</pallas_src>

<mosaic_0001>
module attributes {stable_mosaic.version = 11 : i64} {
  func.func @kernel(%arg0: i32, %arg1: memref<24x16xf32, #tpu.memory_space<vmem>>, %arg2: memref<16x128xf32, #tpu.memory_space<vmem>>, %arg3: memref<1x128xf32, #tpu.memory_space<vmem>>, %arg4: memref<128x128xf32, #tpu.memory_space<vmem>>, %arg5: memref<1x128xf32, #tpu.memory_space<vmem>>, %arg6: memref<128x128xf32, #tpu.memory_space<vmem>>, %arg7: memref<1x128xf32, #tpu.memory_space<vmem>>, %arg8: memref<128x16xf32, #tpu.memory_space<vmem>>, %arg9: memref<1x16xf32, #tpu.memory_space<vmem>>, %arg10: memref<24x16xf32, #tpu.memory_space<vmem>>) attributes {dimension_semantics = [#tpu.dimension_semantics<parallel>], iteration_bounds = array<i64: 2>, scalar_prefetch = 0 : i64, scratch_operands = 0 : i64, tpu.core_type = #tpu.core_type<tc>, window_params = [{transform_indices = @transform_0, window_bounds = array<i64: 24, 16>}, {pipeline_mode = #tpu.pipeline_mode<synchronous>, transform_indices = @transform_1, window_bounds = array<i64: 16, 128>}, {pipeline_mode = #tpu.pipeline_mode<synchronous>, transform_indices = @transform_2, window_bounds = array<i64: 1, 128>}, {pipeline_mode = #tpu.pipeline_mode<synchronous>, transform_indices = @transform_3, window_bounds = array<i64: 128, 128>}, {pipeline_mode = #tpu.pipeline_mode<synchronous>, transform_indices = @transform_4, window_bounds = array<i64: 1, 128>}, {pipeline_mode = #tpu.pipeline_mode<synchronous>, transform_indices = @transform_5, window_bounds = array<i64: 128, 128>}, {pipeline_mode = #tpu.pipeline_mode<synchronous>, transform_indices = @transform_6, window_bounds = array<i64: 1, 128>}, {pipeline_mode = #tpu.pipeline_mode<synchronous>, transform_indices = @transform_7, window_bounds = array<i64: 128, 16>}, {pipeline_mode = #tpu.pipeline_mode<synchronous>, transform_indices = @transform_8, window_bounds = array<i64: 1, 16>}, {transform_indices = @transform_9, window_bounds = array<i64: 24, 16>}]} {
    %c0 = arith.constant 0 : index
    %c0_0 = arith.constant 0 : index
    %0 = vector.load %arg1[%c0, %c0_0] : memref<24x16xf32, #tpu.memory_space<vmem>>, vector<24x16xf32>
    %c0_1 = arith.constant 0 : index
    %c0_2 = arith.constant 0 : index
    %1 = vector.load %arg2[%c0_1, %c0_2] : memref<16x128xf32, #tpu.memory_space<vmem>>, vector<16x128xf32>
    %c0_3 = arith.constant 0 : index
    %c0_4 = arith.constant 0 : index
    %2 = vector.load %arg3[%c0_3, %c0_4] : memref<1x128xf32, #tpu.memory_space<vmem>>, vector<1x128xf32>
    %cst = arith.constant dense<0.000000e+00> : vector<24x128xf32>
    %3 = tpu.matmul %0, %1, %cst {dimension_numbers = #tpu.dot_dimension_numbers<[1], [0], [0], [1], [0, 0, 1, 1], [], []>} : vector<24x16xf32>, vector<16x128xf32>, vector<24x128xf32> -> vector<24x128xf32>
    %4 = vector.broadcast %2 : vector<1x128xf32> to vector<24x128xf32>
    %5 = arith.addf %3, %4 : vector<24x128xf32>
    %cst_5 = arith.constant 0.00999999977 : f32
    %6 = vector.broadcast %cst_5 : f32 to vector<24x128xf32>
    %7 = arith.mulf %6, %5 : vector<24x128xf32>
    %8 = arith.maximumf %5, %7 : vector<24x128xf32>
    %c0_6 = arith.constant 0 : index
    %c0_7 = arith.constant 0 : index
    %9 = vector.load %arg4[%c0_6, %c0_7] : memref<128x128xf32, #tpu.memory_space<vmem>>, vector<128x128xf32>
    %c0_8 = arith.constant 0 : index
    %c0_9 = arith.constant 0 : index
    %10 = vector.load %arg5[%c0_8, %c0_9] : memref<1x128xf32, #tpu.memory_space<vmem>>, vector<1x128xf32>
    %cst_10 = arith.constant dense<0.000000e+00> : vector<24x128xf32>
    %11 = tpu.matmul %8, %9, %cst_10 {dimension_numbers = #tpu.dot_dimension_numbers<[1], [0], [0], [1], [0, 0, 1, 1], [], []>} : vector<24x128xf32>, vector<128x128xf32>, vector<24x128xf32> -> vector<24x128xf32>
    %12 = vector.broadcast %10 : vector<1x128xf32> to vector<24x128xf32>
    %13 = arith.addf %11, %12 : vector<24x128xf32>
    %cst_11 = arith.constant 0.00999999977 : f32
    %14 = vector.broadcast %cst_11 : f32 to vector<24x128xf32>
    %15 = arith.mulf %14, %13 : vector<24x128xf32>
    %16 = arith.maximumf %13, %15 : vector<24x128xf32>
    %c0_12 = arith.constant 0 : index
    %c0_13 = arith.constant 0 : index
    %17 = vector.load %arg6[%c0_12, %c0_13] : memref<128x128xf32, #tpu.memory_space<vmem>>, vector<128x128xf32>
    %c0_14 = arith.constant 0 : index
    %c0_15 = arith.constant 0 : index
    %18 = vector.load %arg7[%c0_14, %c0_15] : memref<1x128xf32, #tpu.memory_space<vmem>>, vector<1x128xf32>
    %cst_16 = arith.constant dense<0.000000e+00> : vector<24x128xf32>
    %19 = tpu.matmul %16, %17, %cst_16 {dimension_numbers = #tpu.dot_dimension_numbers<[1], [0], [0], [1], [0, 0, 1, 1], [], []>} : vector<24x128xf32>, vector<128x128xf32>, vector<24x128xf32> -> vector<24x128xf32>
    %20 = vector.broadcast %18 : vector<1x128xf32> to vector<24x128xf32>
    %21 = arith.addf %19, %20 : vector<24x128xf32>
    %cst_17 = arith.constant 0.00999999977 : f32
    %22 = vector.broadcast %cst_17 : f32 to vector<24x128xf32>
    %23 = arith.mulf %22, %21 : vector<24x128xf32>
    %24 = arith.maximumf %21, %23 : vector<24x128xf32>
    %c0_18 = arith.constant 0 : index
    %c0_19 = arith.constant 0 : index
    %25 = vector.load %arg8[%c0_18, %c0_19] : memref<128x16xf32, #tpu.memory_space<vmem>>, vector<128x16xf32>
    %cst_20 = arith.constant dense<0.000000e+00> : vector<24x16xf32>
    %26 = tpu.matmul %24, %25, %cst_20 {dimension_numbers = #tpu.dot_dimension_numbers<[1], [0], [0], [1], [0, 0, 1, 1], [], []>} : vector<24x128xf32>, vector<128x16xf32>, vector<24x16xf32> -> vector<24x16xf32>
    %c0_21 = arith.constant 0 : index
    %c0_22 = arith.constant 0 : index
    %27 = vector.load %arg9[%c0_21, %c0_22] : memref<1x16xf32, #tpu.memory_space<vmem>>, vector<1x16xf32>
    %28 = vector.broadcast %27 : vector<1x16xf32> to vector<24x16xf32>
    %29 = arith.addf %26, %28 : vector<24x16xf32>
    %c0_23 = arith.constant 0 : index
    %c0_24 = arith.constant 0 : index
    %30 = vector.load %arg10[%c0_23, %c0_24] : memref<24x16xf32, #tpu.memory_space<vmem>>, vector<24x16xf32>
    tpu.vector_store %arg10[%c0_23, %c0_24], %29 {strides = array<i32>} : memref<24x16xf32, #tpu.memory_space<vmem>>, vector<24x16xf32>,
    return
  }
  func.func @transform_0(%arg0: i32) -> (i32, i32) {
    %c0_i32 = arith.constant 0 : i32
    %c0_i32_0 = arith.constant 0 : i32
    return %arg0, %c0_i32 : i32, i32
  }
  func.func @transform_1(%arg0: i32) -> (i32, i32) {
    %c0_i32 = arith.constant 0 : i32
    %c0_i32_0 = arith.constant 0 : i32
    %c0_i32_1 = arith.constant 0 : i32
    return %c0_i32, %c0_i32_0 : i32, i32
  }
  func.func @transform_2(%arg0: i32) -> (i32, i32) {
    %c0_i32 = arith.constant 0 : i32
    %c0_i32_0 = arith.constant 0 : i32
    %c0_i32_1 = arith.constant 0 : i32
    return %c0_i32, %c0_i32_0 : i32, i32
  }
  func.func @transform_3(%arg0: i32) -> (i32, i32) {
    %c0_i32 = arith.constant 0 : i32
    %c0_i32_0 = arith.constant 0 : i32
    %c0_i32_1 = arith.constant 0 : i32
    return %c0_i32, %c0_i32_0 : i32, i32
  }
  func.func @transform_4(%arg0: i32) -> (i32, i32) {
    %c0_i32 = arith.constant 0 : i32
    %c0_i32_0 = arith.constant 0 : i32
    %c0_i32_1 = arith.constant 0 : i32
    return %c0_i32, %c0_i32_0 : i32, i32
  }
  func.func @transform_5(%arg0: i32) -> (i32, i32) {
    %c0_i32 = arith.constant 0 : i32
    %c0_i32_0 = arith.constant 0 : i32
    %c0_i32_1 = arith.constant 0 : i32
    return %c0_i32, %c0_i32_0 : i32, i32
  }
  func.func @transform_6(%arg0: i32) -> (i32, i32) {
    %c0_i32 = arith.constant 0 : i32
    %c0_i32_0 = arith.constant 0 : i32
    %c0_i32_1 = arith.constant 0 : i32
    return %c0_i32, %c0_i32_0 : i32, i32
  }
  func.func @transform_7(%arg0: i32) -> (i32, i32) {
    %c0_i32 = arith.constant 0 : i32
    %c0_i32_0 = arith.constant 0 : i32
    %c0_i32_1 = arith.constant 0 : i32
    return %c0_i32, %c0_i32_0 : i32, i32
  }
  func.func @transform_8(%arg0: i32) -> (i32, i32) {
    %c0_i32 = arith.constant 0 : i32
    %c0_i32_0 = arith.constant 0 : i32
    %c0_i32_1 = arith.constant 0 : i32
    return %c0_i32, %c0_i32_0 : i32, i32
  }
  func.func @transform_9(%arg0: i32) -> (i32, i32) {
    %c0_i32 = arith.constant 0 : i32
    %c0_i32_0 = arith.constant 0 : i32
    return %arg0, %c0_i32 : i32, i32
  }
}

</mosaic_0001>

<bundles_post_ra>
// kernel: encoder_forward.1
= control target key start
LH: loop header
LB: loop body
LE: loop exit
PB: predicated region body
PF: predicated region fallthrough
CT: control target
= control target key end

     0   :  { %s1201_s30 = smov 0   ;;  %s1450_s0 = inlined_call_operand.vmem [shape: f32[48,16], index: 0, kind: input, shape index: {}]   ;;  %s1451_s1 = inlined_call_operand.vmem [shape: f32[16,128], index: 1, kind: input, shape index: {}]   ;;  %s1452_s2 = inlined_call_operand.vmem [shape: f32[1,128], index: 2, kind: input, shape index: {}]   ;;  %s1453_s3 = inlined_call_operand.vmem [shape: f32[128,128], index: 3, kind: input, shape index: {}]   ;;  %s1454_s4 = inlined_call_operand.vmem [shape: f32[1,128], index: 4, kind: input, shape index: {}]   ;;  %s1455_s5 = inlined_call_operand.vmem [shape: f32[128,128], index: 5, kind: input, shape index: {}]   ;;  %s1456_s6 = inlined_call_operand.vmem [shape: f32[1,128], index: 6, kind: input, shape index: {}]   ;;  %s1457_s7 = inlined_call_operand.vmem [shape: f32[128,16], index: 7, kind: input, shape index: {}]   ;;  %s1458_s8 = inlined_call_operand.vmem [shape: f32[1,16], index: 8, kind: input, shape index: {}]   ;;  %s1459_s9 = inlined_call_operand.vmem [shape: f32[48,16], index: 9, kind: output, shape index: {}]  }
   0x1 LB: > { %s824_s10 = sadd.s32 4294967295, %s1146_s30   ;;  %p828_p0 = scmp.ge.s32.totalorder %s1146_s30, 1  ;;  %s1146_s30 = sphi %s1201_s30, %s19_s30  }
   0x2   : > { %p288_p1 = scmp.lt.s32.totalorder %s1146_s30, 3 }
   0x4   : > { %p289_p2 = pnand %p828_p0, %p288_p1 }
   0x5   : > { %v339_v0 = vld [vmem:[%s1451_s1] sm:$0xff] (!%p289_p2)  ;;  %v340_v1 = vld [vmem:[%s1451_s1 + $0x8] sm:$0xff] (!%p289_p2)  ;;  %s324_s15 = smul.u32 (!%p289_p2), 3, %s824_s10  ;;  %v1148_v2 = vmov (!%p289_p2), 0.0|0.0   ;;  %vm1149_vm0 = vmmov (!%p289_p2), 0   ;;  %v1150_v4 = vmov (!%p289_p2), 0.0  }
   0x6   : > { %292 = sbr.rel (%p289_p2) target bundleno = 894 (0x37e), region = 56  ;;  %1038 = vmatprep.subr.bf16.mxu0 (!%p289_p2), %v1148_v2  ;;  %v1039_v3 = vpack.c.bf16 (!%p289_p2), %v340_v1, %v339_v0  ;;  %906 = vmatprep.mubr.msk.f32.mxu0 (!%p289_p2), %vm1149_vm0, %v1150_v4  ;;  %v444_v5 = vld [vmem:[%s1453_s3] sm:$0xff] (!%p289_p2)  ;;  %v445_v6 = vld [vmem:[%s1453_s3 + $0x8] sm:$0xff] (!%p289_p2)  ;;  %v446_v7 = vld [vmem:[%s1453_s3 + $0x10] sm:$0xff] (!%p289_p2)  ;;  %vm348_vm1 = vcmask (!%p289_p2), 130048  }
   0x7   : > { %p325_p3 = scmp.lt.s32.totalorder (!%p289_p2), %s324_s15, 5  ;;  %1041 = vmatprep.subr.bf16.mxu1 (!%p289_p2), %v1148_v2  ;;  %v1042_v8 = vpack.c.bf16 (!%p289_p2), %v445_v6, %v444_v5  ;;  %v447_v9 = vld [vmem:[%s1453_s3 + $0x18] sm:$0xff] (!%p289_p2)  ;;  %947 = vmatprep.mubr.msk.f32.mxu1 (!%p289_p2), %vm1149_vm0, %v1150_v4  ;;  %v448_v11 = vld [vmem:[%s1453_s3 + $0x20] sm:$0xff] (!%p289_p2)  ;;  %v449_v12 = vld [vmem:[%s1453_s3 + $0x28] sm:$0xff] (!%p289_p2) }
   0x8   : > { %1040 = vmatpush3.bf16.msra.mxu0 (!%p289_p2), %v1039_v3  ;;  %v1045_v10 = vpack.c.bf16 (!%p289_p2), %v447_v9, %v446_v7  ;;  %v1048_v14 = vpack.c.bf16 (!%p289_p2), %v449_v12, %v448_v11  ;;  %v450_v15 = vld [vmem:[%s1453_s3 + $0x30] sm:$0xff] (!%p289_p2)  ;;  %v451_v16 = vld [vmem:[%s1453_s3 + $0x38] sm:$0xff] (!%p289_p2)  ;;  %v452_v19 = vld [vmem:[%s1453_s3 + $0x40] sm:$0xff] (!%p289_p2) }
   0x9   : > { %1043 = vmatpush3.bf16.msra.mxu1 (!%p289_p2), %v1042_v8  ;;  %1065 = vmatprep.subr.bf16.mxu0 (!%p289_p2), %v1148_v2  ;;  %v1051_v18 = vpack.c.bf16 (!%p289_p2), %v451_v16, %v450_v15  ;;  %v453_v20 = vld [vmem:[%s1453_s3 + $0x48] sm:$0xff] (!%p289_p2)  ;;  %v454_v23 = vld [vmem:[%s1453_s3 + $0x50] sm:$0xff] (!%p289_p2)  ;;  %v455_v24 = vld [vmem:[%s1453_s3 + $0x58] sm:$0xff] (!%p289_p2) }
   0xa   : > { %1044 = vmatprep.subr.bf16.mxu1 (!%p289_p2), %v1148_v2  ;;  %v1054_v22 = vpack.c.bf16 (!%p289_p2), %v453_v20, %v452_v19  ;;  %v1057_v25 = vpack.c.bf16 (!%p289_p2), %v455_v24, %v454_v23  ;;  %v456_v26 = vld [vmem:[%s1453_s3 + $0x60] sm:$0xff] (!%p289_p2)  ;;  %v457_v27 = vld [vmem:[%s1453_s3 + $0x68] sm:$0xff] (!%p289_p2)  ;;  %v458_v29 = vld [vmem:[%s1453_s3 + $0x70] sm:$0xff] (!%p289_p2) }
   0xb   : > { %v1060_v28 = vpack.c.bf16 (!%p289_p2), %v457_v27, %v456_v26  ;;  %v459_v30 = vld [vmem:[%s1453_s3 + $0x78] sm:$0xff] (!%p289_p2)  ;;  %v553_v32 = vld [vmem:[%s1455_s5] sm:$0xff] (!%p289_p2)  ;;  %v554_v33 = vld [vmem:[%s1455_s5 + $0x8] sm:$0xff] (!%p289_p2) }
   0xc   : > { %v1063_v31 = vpack.c.bf16 (!%p289_p2), %v459_v30, %v458_v29  ;;  %v555_v34 = vld [vmem:[%s1455_s5 + $0x10] sm:$0xff] (!%p289_p2)  ;;  %v1066_v35 = vpack.c.bf16 (!%p289_p2), %v554_v33, %v553_v32  ;;  %v556_v36 = vld [vmem:[%s1455_s5 + $0x18] sm:$0xff] (!%p289_p2)  ;;  %v557_v38 = vld [vmem:[%s1455_s5 + $0x20] sm:$0xff] (!%p289_p2) }
   0xd   : > { %s1461_s15 = smov (!%p325_p3, %s324_s15), 5  ;;  %1046 = vmatpush3.bf16.msra.mxu1 %v1045_v10  ;;  %v1069_v37 = vpack.c.bf16 %v556_v36, %v555_v34  ;;  %v558_v39 = vld [vmem:[%s1455_s5 + $0x28] sm:$0xff]  ;;  %v559_v41 = vld [vmem:[%s1455_s5 + $0x30] sm:$0xff]  ;;  %v560_v42 = vld [vmem:[%s1455_s5 + $0x38] sm:$0xff] }
   0xe   : > { %s829_s28 = sshll.u32 %s1461_s15, 3  ;;  %1047 = vmatprep.subr.bf16.mxu1 %v1148_v2  ;;  %v1072_v40 = vpack.c.bf16 %v558_v39, %v557_v38  ;;  %v1075_v43 = vpack.c.bf16 %v560_v42, %v559_v41  ;;  %v561_v44 = vld [vmem:[%s1455_s5 + $0x40] sm:$0xff]  ;;  %v562_v45 = vld [vmem:[%s1455_s5 + $0x48] sm:$0xff]  ;;  %v563_v47 = vld [vmem:[%s1455_s5 + $0x50] sm:$0xff] }
   0xf   : > { %s328_s11 = scalar_lea.vmem %s1450_s0, %s829_s28  ;;  %v1078_v46 = vpack.c.bf16 %v562_v45, %v561_v44  ;;  %v564_v48 = vld [vmem:[%s1455_s5 + $0x58] sm:$0xff]  ;;  %v831_v50 = vld [vmem:[%s1452_s2] ss:$0 sm:$0xff]  ;;  %v566_v5 = vld [vmem:[%s1455_s5 + $0x68] sm:$0xff]  ;;  %s334_s17 = scalar_lea.vmem %s1459_s9, %s829_s28 }
  0x10   : > { %v336_v13 = vld [vmem:[%s328_s11] sm:$0xff]  ;;  %v337_v17 = vld [vmem:[%s328_s11 + $0x8] sm:$0xff]  ;;  %v338_v21 = vld [vmem:[%s328_s11 + $0x10] sm:$0xff]  ;;  %v1081_v49 = vpack.c.bf16 %v564_v48, %v563_v47 }
  0x11   : > { %907 = vmatmul.mubr.msk.f32.vlgmr.msra.gmra.mrb[0].mxu0 %vm348_vm1, %v336_v13  ;;  %1049 = vmatpush3.bf16.msra.mxu1 %v1048_v14  ;;  %v565_v3 = vld [vmem:[%s1455_s5 + $0x60] sm:$0xff]  ;;  %v567_v7 = vld [vmem:[%s1455_s5 + $0x70] sm:$0xff]  ;;  %v568_v8 = vld [vmem:[%s1455_s5 + $0x78] sm:$0xff] }
  0x12   : > { %909 = vmatprep.mubr.msk.f32.mxu0 %vm1149_vm0, %v1150_v4  ;;  %1050 = vmatprep.subr.bf16.mxu1 %v1148_v2  ;;  %v1084_v6 = vpack.c.bf16 %v566_v5, %v565_v3  ;;  %v1087_v9 = vpack.c.bf16 %v568_v8, %v567_v7  ;;  %v662_v10 = vld [vmem:[%s1457_s7] sm:$0xff]  ;;  %v663_v11 = vld [vmem:[%s1457_s7 + $0x8] sm:$0xff]  ;;  %v664_v13 = vld [vmem:[%s1457_s7 + $0x10] sm:$0xff] }
  0x13   : > { %1067 = vmatpush3.bf16.msra.mxu0 %v1066_v35  ;;  %v1090_v12 = vpack.c.bf16 %v663_v11, %v662_v10  ;;  %v665_v14 = vld [vmem:[%s1457_s7 + $0x18] sm:$0xff]  ;;  %v666_v16 = vld [vmem:[%s1457_s7 + $0x20] sm:$0xff]  ;;  %v668_v19 = vld [vmem:[%s1457_s7 + $0x30] sm:$0xff] }
  0x14   : > { %1068 = vmatprep.subr.bf16.mxu0 %v1148_v2  ;;  %v1093_v15 = vpack.c.bf16 %v665_v14, %v664_v13  ;;  %v669_v20 = vld [vmem:[%s1457_s7 + $0x38] sm:$0xff]  ;;  %v671_v23 = vld [vmem:[%s1457_s7 + $0x48] sm:$0xff]  ;;  %v674_v44 = vld [vmem:[%s1457_s7 + $0x60] sm:$0xff] }
  0x15   : > { %910 = vmatmul.mubr.msk.f32.gmra.mrb[2].mxu0 %vm348_vm1, %v337_v17  ;;  %1052 = vmatpush3.bf16.msra.mxu1 %v1051_v18  ;;  %v667_v17 = vld [vmem:[%s1457_s7 + $0x28] sm:$0xff]  ;;  %v673_v26 = vld [vmem:[%s1457_s7 + $0x58] sm:$0xff]  ;;  %v676_v47 = vld [vmem:[%s1457_s7 + $0x70] sm:$0xff] }
  0x16   : > { %912 = vmatprep.mubr.msk.f32.mxu0 %vm1149_vm0, %v1150_v4  ;;  %1053 = vmatprep.subr.bf16.mxu1 %v1148_v2  ;;  %v1096_v18 = vpack.c.bf16 %v667_v17, %v666_v16  ;;  %v675_v45 = vld [vmem:[%s1457_s7 + $0x68] sm:$0xff]  ;;  %v677_v48 = vld [vmem:[%s1457_s7 + $0x78] sm:$0xff] }
  0x17   : > { %1070 = vmatpush3.bf16.msra.mxu0 %v1069_v37 }
  0x18   : > { %1071 = vmatprep.subr.bf16.mxu0 %v1148_v2 }
  0x19   : > { %913 = vmatmul.mubr.msk.f32.gmra.mrb[4].mxu0 %vm348_vm1, %v338_v21  ;;  %1055 = vmatpush3.bf16.msra.mxu1 %v1054_v22  ;;  %v1099_v21 = vpack.c.bf16 %v669_v20, %v668_v19  ;;  %v670_v22 = vld [vmem:[%s1457_s7 + $0x40] sm:$0xff] }
  0x1a   : > { %988 = vmatprep.mubr.msk.f32.mxu0 %vm1149_vm0, %v1150_v4  ;;  %1056 = vmatprep.subr.bf16.mxu1 %v1148_v2  ;;  %v1102_v24 = vpack.c.bf16 %v671_v23, %v670_v22 }
  0x1b   : > { %1073 = vmatpush3.bf16.msra.mxu0 %v1072_v40 }
  0x1c   : > { %1074 = vmatprep.subr.bf16.mxu0 %v1148_v2 }
  0x1d   : > { %1058 = vmatpush3.bf16.msra.mxu1 %v1057_v25  ;;  %v672_v25 = vld [vmem:[%s1457_s7 + $0x50] sm:$0xff] }
  0x1e   : > { %1059 = vmatprep.subr.bf16.mxu1 %v1148_v2  ;;  %v1105_v27 = vpack.c.bf16 %v673_v26, %v672_v25 }
  0x1f   : > { %1076 = vmatpush3.bf16.msra.mxu0 %v1075_v43 }
  0x20   : > { %1077 = vmatprep.subr.bf16.mxu0 %v1148_v2 }
  0x21   : > { %1061 = vmatpush3.bf16.msra.mxu1 %v1060_v28  ;;  %v835_v28 = vld [vmem:[%s1454_s4] ss:$0 sm:$0xff] }
  0x22   : > { %1062 = vmatprep.subr.bf16.mxu1 %v1148_v2 }
  0x23   : > { %1079 = vmatpush3.bf16.msra.mxu0 %v1078_v46  ;;  %v1108_v46 = vpack.c.bf16 %v675_v45, %v674_v44 }
  0x24   : > { %1080 = vmatprep.subr.bf16.mxu0 %v1148_v2 }
  0x25   : > { %1064 = vmatpush3.bf16.msra.mxu1 %v1063_v31 }
  0x26   : > { %1113 = vmatprep.subr.bf16.mxu1 %v1148_v2 }
  0x27   : > { %1082 = vmatpush3.bf16.msra.mxu0 %v1081_v49  ;;  %v1111_v49 = vpack.c.bf16 %v677_v48, %v676_v47 }
  0x28   : > { %1083 = vmatprep.subr.bf16.mxu0 %v1148_v2 }
  0x2b   : > { %1085 = vmatpush3.bf16.msra.mxu0 %v1084_v6 }
  0x2c   : > { %1086 = vmatprep.subr.bf16.mxu0 %v1148_v2 }
  0x2f   : > { %1088 = vmatpush3.bf16.msra.mxu0 %v1087_v9 }
  0x30   : > { %1089 = vmatprep.subr.bf16.mxu0 %v1148_v2 }
  0xe4   : > { %v424_v51 = vpop.f32.mrb[0].mxu0 }
  0xe5   : > { %v425_v52 = vadd.f32 %v831_v50, %v424_v51  ;;  %v908_v53 = vpop.f32.mrb[1].mxu0 }
  0xe7   : > { %v438_v54 = vmul.f32 0.01, %v425_v52 }
  0xe8   : > { %v429_v55 = vpop.f32.mrb[2].mxu0 }
  0xe9   : > { %v441_v56 = vmax.f32 %v425_v52, %v438_v54  ;;  %v430_v57 = vadd.f32 %v831_v50, %v429_v55  ;;  %v911_v58 = vpop.f32.mrb[3].mxu0 }
  0xeb   : > { %v439_v59 = vmul.f32 0.01, %v430_v57  ;;  %948 = vmatmul.mubr.f32.vlgmr.msra.gmra.mrb[0].mxu1 %v441_v56 }
  0xec   : > { %v434_v60 = vpop.f32.mrb[4].mxu0  ;;  %950 = vmatprep.mubr.msk.f32.mxu1 %vm1149_vm0, %v1150_v4  ;;  %1121 = vmatpush3.bf16.msra.mxu1 %v1090_v12 }
  0xed   : > { %v442_v61 = vmax.f32 %v430_v57, %v439_v59  ;;  %v435_v62 = vadd.f32 %v831_v50, %v434_v60  ;;  %v914_v63 = vpop.f32.mrb[5].mxu0  ;;  %1114 = vmatprep.subr.bf16.mxu1 %v1148_v2  ;;  %v836_v50 = vld [vmem:[%s1456_s6] ss:$0 sm:$0xff] }
  0xef   : > { %v440_v0 = vmul.f32 0.01, %v435_v62  ;;  %951 = vmatmul.mubr.f32.gmra.mrb[2].mxu1 %v442_v61 }
  0xf0   : > { %953 = vmatprep.mubr.msk.f32.mxu1 %vm1149_vm0, %v1150_v4  ;;  %1122 = vmatpush3.bf16.msra.mxu1 %v1093_v15 }
  0xf1   : > { %v443_v1 = vmax.f32 %v435_v62, %v440_v0  ;;  %1115 = vmatprep.subr.bf16.mxu1 %v1148_v2 }
  0xf3   : > { %954 = vmatmul.mubr.f32.gmra.mrb[4].mxu1 %v443_v1  ;;  %v837_v1 = vld [vmem:[%s1458_s8] ss:$0 sm:$0xff] }
  0xf4   : > { %1032 = vmatprep.mubr.msk.f32.mxu1 %vm1149_vm0, %v1150_v4  ;;  %1123 = vmatpush3.bf16.msra.mxu1 %v1096_v18 }
  0xf5   : > { %1116 = vmatprep.subr.bf16.mxu1 %v1148_v2 }
  0xf8   : > { %1124 = vmatpush3.bf16.msra.mxu1 %v1099_v21 }
  0xf9   : > { %1117 = vmatprep.subr.bf16.mxu1 %v1148_v2 }
  0xfc   : > { %1125 = vmatpush3.bf16.msra.mxu1 %v1102_v24 }
  0xfd   : > { %1118 = vmatprep.subr.bf16.mxu1 %v1148_v2 }
 0x100   : > { %1126 = vmatpush3.bf16.msra.mxu1 %v1105_v27 }
 0x101   : > { %1119 = vmatprep.subr.bf16.mxu1 %v1148_v2 }
 0x104   : > { %1127 = vmatpush3.bf16.msra.mxu1 %v1108_v46 }
 0x105   : > { %1120 = vmatprep.subr.bf16.mxu1 %v1148_v2 }
 0x108   : > { %1128 = vmatpush3.bf16.msra.mxu1 %v1111_v49 }
 0x1be   : > { %v533_v29 = vpop.f32.mrb[0].mxu1 }
 0x1bf   : > { %v534_v30 = vadd.f32 %v835_v28, %v533_v29  ;;  %v949_v31 = vpop.f32.mrb[1].mxu1 }
 0x1c1   : > { %v547_v32 = vmul.f32 0.01, %v534_v30 }
 0x1c2   : > { %v538_v33 = vpop.f32.mrb[2].mxu1 }
 0x1c3   : > { %v550_v34 = vmax.f32 %v534_v30, %v547_v32  ;;  %v539_v35 = vadd.f32 %v835_v28, %v538_v33  ;;  %v952_v36 = vpop.f32.mrb[3].mxu1 }
 0x1c5   : > { %v548_v37 = vmul.f32 0.01, %v539_v35  ;;  %989 = vmatmul.mubr.f32.vlgmr.msra.gmra.mrb[6].mxu0 %v550_v34 }
 0x1c6   : > { %v543_v38 = vpop.f32.mrb[4].mxu1  ;;  %991 = vmatprep.mubr.msk.f32.mxu0 %vm1149_vm0, %v1150_v4  ;;  %1091 = vmatpush3.bf16.msra.mxu0 %v1090_v12 }
 0x1c7   : > { %v551_v39 = vmax.f32 %v539_v35, %v548_v37  ;;  %v544_v40 = vadd.f32 %v835_v28, %v543_v38  ;;  %v955_v41 = vpop.f32.mrb[5].mxu1  ;;  %1092 = vmatprep.subr.bf16.mxu0 %v1148_v2 }
 0x1c9   : > { %v549_v42 = vmul.f32 0.01, %v544_v40  ;;  %992 = vmatmul.mubr.f32.gmra.mrb[8].mxu0 %v551_v39 }
 0x1ca   : > { %994 = vmatprep.mubr.msk.f32.mxu0 %vm1149_vm0, %v1150_v4  ;;  %1094 = vmatpush3.bf16.msra.mxu0 %v1093_v15 }
 0x1cb   : > { %v552_v43 = vmax.f32 %v544_v40, %v549_v42  ;;  %1095 = vmatprep.subr.bf16.mxu0 %v1148_v2 }
 0x1cd   : > { %995 = vmatmul.mubr.f32.gmra.mrb[10].mxu0 %v552_v43 }
 0x1ce   : > { %1097 = vmatpush3.bf16.msra.mxu0 %v1096_v18  ;;  %1029 = vmatprep.mubr.msk.f32.mxu0 %vm1149_vm0, %v1150_v4 }
 0x1cf   : > { %1098 = vmatprep.subr.bf16.mxu0 %v1148_v2 }
 0x1d2   : > { %1100 = vmatpush3.bf16.msra.mxu0 %v1099_v21 }
 0x1d3   : > { %1101 = vmatprep.subr.bf16.mxu0 %v1148_v2 }
 0x1d6   : > { %1103 = vmatpush3.bf16.msra.mxu0 %v1102_v24 }
 0x1d7   : > { %1104 = vmatprep.subr.bf16.mxu0 %v1148_v2 }
 0x1da   : > { %1106 = vmatpush3.bf16.msra.mxu0 %v1105_v27 }
 0x1db   : > { %1107 = vmatprep.subr.bf16.mxu0 %v1148_v2 }
 0x1de   : > { %1109 = vmatpush3.bf16.msra.mxu0 %v1108_v46 }
 0x1df   : > { %1110 = vmatprep.subr.bf16.mxu0 %v1148_v2 }
 0x1e2   : > { %1112 = vmatpush3.bf16.msra.mxu0 %v1111_v49 }
 0x298   : > { %v642_v51 = vpop.f32.mrb[6].mxu0 }
 0x299   : > { %v643_v52 = vadd.f32 %v836_v50, %v642_v51  ;;  %v990_v53 = vpop.f32.mrb[7].mxu0 }
 0x29b   : > { %v656_v54 = vmul.f32 0.01, %v643_v52 }
 0x29c   : > { %v647_v55 = vpop.f32.mrb[8].mxu0 }
 0x29d   : > { %v659_v56 = vmax.f32 %v643_v52, %v656_v54  ;;  %v648_v57 = vadd.f32 %v836_v50, %v647_v55  ;;  %v993_v58 = vpop.f32.mrb[9].mxu0 }
 0x29f   : > { %v657_v59 = vmul.f32 0.01, %v648_v57  ;;  %1030 = vmatmul.mubr.f32.vlgmr.msra.gmra.mrb[12].mxu0 %v659_v56 }
 0x2a0   : > { %v652_v60 = vpop.f32.mrb[10].mxu0 }
 0x2a1   : > { %v660_v2 = vmax.f32 %v648_v57, %v657_v59  ;;  %v653_v61 = vadd.f32 %v836_v50, %v652_v60  ;;  %v996_v62 = vpop.f32.mrb[11].mxu0 }
 0x2a3   : > { %v658_v63 = vmul.f32 0.01, %v653_v61  ;;  %1033 = vmatmul.mubr.f32.vlgmr.msra.gmra.mrb[6].mxu1 %v660_v2 }
 0x2a4   : > { %1035 = vmatprep.mubr.msk.f32.mxu1 %vm1149_vm0, %v1150_v4 }
 0x2a5   : > { %v661_v0 = vmax.f32 %v653_v61, %v658_v63 }
 0x2a7   : > { %1036 = vmatmul.mubr.f32.gmra.mrb[8].mxu1 %v661_v0 }
 0x372   : > { %v751_v3 = vpop.f32.mrb[12].mxu0 }
 0x373   : > { %v752_v5 = vadd.f32 %v837_v1, %v751_v3  ;;  %v1031_v6 = vpop.f32.mrb[13].mxu0 }
 0x375   : > { %765 = vst.msk [vmem:[%s334_s17] sm:$0xff] %vm348_vm1, %v752_v5 }
 0x376   : > { %v756_v7 = vpop.f32.mrb[6].mxu1 }
 0x377   : > { %v757_v8 = vadd.f32 %v837_v1, %v756_v7  ;;  %v1034_v9 = vpop.f32.mrb[7].mxu1 }
 0x379   : > { %766 = vst.msk [vmem:[%s334_s17 + $0x8] sm:$0xff] %vm348_vm1, %v757_v8 }
 0x37a   : > { %v761_v4 = vpop.f32.mrb[8].mxu1 }
 0x37b   : > { %v762_v10 = vadd.f32 %v837_v1, %v761_v4  ;;  %v1037_v11 = vpop.f32.mrb[9].mxu1 }
 0x37d   : > { %767 = vst.msk [vmem:[%s334_s17 + $0x10] sm:$0xff] %vm348_vm1, %v762_v10 }
 0x37e PF: > { %s19_s30 = sadd.s32 1, %s1146_s30  }
 0x37f   : > { %p16_p4 = scmp.ge.s32.totalorder %s19_s30, 4  }
 0x381   :  { %18 = sbr.rel (!%p16_p4) target bundleno = 1 (0x1), region = 86 }

</bundles_post_ra>
